<compile_context>
chip_gen: v5e
topology: v5e:2x2
jax: 0.10.0
libtpu: 0.0.40
codegen_flags: <defaults>
</compile_context>

<pallas_src>
import math

import jax
import jax.numpy as jnp
import numpy as np
from jax.experimental import pallas as pl
from jax.experimental.pallas import tpu as pltpu


def _round_up(x, m):
    return (x + m - 1) // m * m


def _deepwalk_kernel(nodes_ref, embc_ref, probs_ref, out_ref):
    """Grid = (batch_tiles [parallel], 2N_tiles [arbitrary / reduction])."""
    n_idx = pl.program_id(1)
    TN, _ = probs_ref.shape            # (TN, Dp) bf16 probs tile
    L, TB = nodes_ref.shape            # (L, TB)  int32 path nodes for this batch tile

    # ---- once per batch tile: zero the resident NLL accumulator ----
    @pl.when(n_idx == 0)
    def _():
        out_ref[...] = jnp.zeros_like(out_ref)

    # ---- ONE MXU matmul covering every path step for this 2N tile ----
    # scores[r, b] = probs[row0 + r] . embed_center[b]          (TN, TB) f32
    scores = jnp.dot(probs_ref[...], embc_ref[...],
                     preferred_element_type=jnp.float32)

    row0 = n_idx * TN
    CH = min(128, TN)                  # row chunk for the select/reduce (vreg pressure)
    n_ch = TN // CH
    ch_iota = jax.lax.broadcasted_iota(jnp.int32, (CH, 1), 0)   # (CH, 1) local rows

    nodes = nodes_ref[...]             # (L, TB) int32

    nll = jnp.zeros((1, TB), jnp.float32)
    # L = log2(num_nodes) - 1 is small and static -> unrolled Python loop.
    for l in range(L):
        node_l = nodes[l:l + 1, :]                               # (1, TB)
        local = node_l - row0                                    # (1, TB) local row index
        # selected dot product (0 if this step's node is not in this 2N tile),
        # computed chunk-by-chunk to keep temporaries <= 16 vregs each.
        s_l = jnp.zeros((1, TB), jnp.float32)
        for c in range(n_ch):
            m = (ch_iota + c * CH) == local                      # (CH, TB) mask
            s_l = s_l + jnp.sum(
                jnp.where(m, scores[c * CH:(c + 1) * CH, :], 0.0),
                axis=0, keepdims=True)
        # does this 2N tile contain this step's node?  scalar range check, (1, TB)
        hit = jnp.logical_and(local >= 0, local < TN).astype(jnp.float32)
        # sign from node parity: +1 if even, -1 if odd
        sign = (1 - 2 * (node_l & 1)).astype(jnp.float32)
        z = sign * s_l
        # -log(sigmoid(z)) == softplus(-z): numerically stable, no divide.
        softplus_neg_z = jnp.maximum(-z, 0.0) + jnp.log1p(jnp.exp(-jnp.abs(z)))
        nll = nll + hit * softplus_neg_z

    out_ref[...] += nll.reshape(out_ref.shape)


def deepwalk_hier_softmax_forward(center, context, emb_table, probs_table,
                                  num_nodes, *, tile_b=128, tile_n_max=256):
    """Pallas implementation of DeepWalk_HierSoftmax.forward(center, context)."""
    assert (num_nodes & (num_nodes - 1)) == 0, "num_nodes must be a power of two"
    B = center.shape[0]
    N, D = emb_table.shape
    twoN = probs_table.shape[0]

    # ---- glue: binary-tree path construction (integer bookkeeping) ----
    max_path_len = int(math.log2(num_nodes))
    L = max_path_len - 1                       # torch loop runs i = 1 .. max_path_len-1
    assert L >= 1, "num_nodes must be >= 4"
    context_node = (num_nodes + context).astype(jnp.int32)                    # (B,)
    steps = jnp.arange(1, max_path_len, dtype=jnp.int32)                      # (L,)
    path_nodes = (context_node[None, :] >> steps[:, None]).astype(jnp.int32)  # (L, B)

    # ---- center-embedding gather hoisted out of the kernel (tiny, plain JAX) ----
    embed_center = emb_table[center]                                           # (B, D)

    # ---- pad to MXU / lane-friendly shapes (zero padding is exact) ----
    Bp = _round_up(B, tile_b)                    # batch -> lane axis, >= 128
    Dp = _round_up(D, 128)                       # embedding dim -> MXU contraction
    TN = min(tile_n_max, _round_up(twoN, 128))   # 2N reduction-tile size
    twoNp = _round_up(twoN, TN)

    nodes_pad = jnp.zeros((L, Bp), jnp.int32).at[:, :B].set(path_nodes)
    embc = jnp.zeros((Dp, Bp), jnp.bfloat16).at[:D, :B].set(
        embed_center.astype(jnp.bfloat16).T)
    probs_p = jnp.zeros((twoNp, Dp), jnp.bfloat16).at[:twoN, :D].set(
        probs_table.astype(jnp.bfloat16))

    nb = Bp // tile_b
    nn = twoNp // TN

    grid_spec = pltpu.PrefetchScalarGridSpec(
        num_scalar_prefetch=0,
        grid=(nb, nn),
        in_specs=[
            pl.BlockSpec((L, tile_b), lambda b, n: (0, b)),      # path nodes
            pl.BlockSpec((Dp, tile_b), lambda b, n: (0, b)),     # center embeddings
            pl.BlockSpec((TN, Dp), lambda b, n: (n, 0)),         # probs tile (streamed)
        ],
        out_specs=pl.BlockSpec((1, 1, tile_b), lambda b, n: (b, 0, 0)),
    )

    cost = pl.CostEstimate(
        flops=int(2 * Bp * Dp * twoNp),
        transcendentals=int(Bp * L * nn),
        bytes_accessed=int(4 * L * Bp * nn + 2 * Dp * Bp * nn
                           + 2 * nb * twoNp * Dp + 4 * nb * tile_b),
    )

    out = pl.pallas_call(
        _deepwalk_kernel,
        out_shape=jax.ShapeDtypeStruct((nb, 1, tile_b), jnp.float32),
        grid_spec=grid_spec,
        compiler_params=pltpu.CompilerParams(
            dimension_semantics=("parallel", "arbitrary")),
        cost_estimate=cost,
    )(nodes_pad, embc, probs_p)

    # lane-dense (nb, 1, TB) -> (B, 1) to match the module's output shape.
    return out.reshape(Bp)[:B].reshape(B, 1)


def reference_forward(center, context, emb_table, probs_table, num_nodes):
    """Pure-JAX mirror of the PyTorch forward (for verification)."""
    embed_center = emb_table[center]                                   # (B, D)
    context_node = num_nodes + context
    max_path_len = int(math.log2(num_nodes))
    logp = jnp.zeros((center.shape[0], 1), jnp.float32)
    for i in range(1, max_path_len):
        nodes = context_node >> i
        signs = jnp.where(nodes % 2 == 0, 1.0, -1.0)[:, None]
        dot = jnp.sum(probs_table[nodes] * embed_center, axis=1, keepdims=True)
        logp = logp + jnp.log(1.0 / (1.0 + jnp.exp(-(signs * dot))))
    return -logp


if __name__ == "__main__":
    num_nodes = 32          # power of two (required by the original code too)
    embedding_dim = 32
    batch = 8

    key = jax.random.PRNGKey(0)
    k_emb, k_probs, k_center, k_context = jax.random.split(key, 4)

    # nn.Embedding default init: N(0, 1);  probs_tensor: torch.rand -> U[0, 1)
    emb_table = jax.random.normal(k_emb, (num_nodes, embedding_dim), dtype=jnp.float32)
    probs_table = jax.random.uniform(k_probs, (2 * num_nodes, embedding_dim),
                                     dtype=jnp.float32)
    center = jax.random.randint(k_center, (batch,), 0, num_nodes, dtype=jnp.int32)
    context = jax.random.randint(k_context, (batch,), 0, num_nodes, dtype=jnp.int32)

    out = deepwalk_hier_softmax_forward(center, context, emb_table, probs_table,
                                        num_nodes)
    out = jax.block_until_ready(out)
    assert out.shape == (batch, 1)

    # Reference on bf16-rounded tables (the kernel matmul operands are bf16 with
    # f32 accumulation), so the comparison is apples-to-apples and tight.
    emb_bf = emb_table.astype(jnp.bfloat16).astype(jnp.float32)
    probs_bf = probs_table.astype(jnp.bfloat16).astype(jnp.float32)
    ref = reference_forward(center, context, emb_bf, probs_bf, num_nodes)
    np.testing.assert_allclose(np.asarray(out), np.asarray(ref), rtol=5e-3, atol=5e-3)

    # Sanity against the full-precision reference as well (loose: bf16 operand cast).
    ref_f32 = reference_forward(center, context, emb_table, probs_table, num_nodes)
    np.testing.assert_allclose(np.asarray(out), np.asarray(ref_f32), rtol=5e-2, atol=5e-2)

    print("KERNEL_OK")
</pallas_src>

<mosaic_0001>
module attributes {stable_mosaic.version = 11 : i64} {
  func.func @_deepwalk_kernel(%arg0: i32, %arg1: i32, %arg2: memref<4x128xi32, #tpu.memory_space<vmem>>, %arg3: memref<128x128xbf16, #tpu.memory_space<vmem>>, %arg4: memref<128x128xbf16, #tpu.memory_space<vmem>>, %arg5: memref<1x1x128xf32, #tpu.memory_space<vmem>>) attributes {dimension_semantics = [#tpu.dimension_semantics<parallel>, #tpu.dimension_semantics<arbitrary>], iteration_bounds = array<i64: 1, 1>, scalar_prefetch = 0 : i64, scratch_operands = 0 : i64, tpu.core_type = #tpu.core_type<tc>, window_params = [{transform_indices = @transform_0, window_bounds = array<i64: 4, 128>}, {transform_indices = @transform_1, window_bounds = array<i64: 128, 128>}, {transform_indices = @transform_2, window_bounds = array<i64: 128, 128>}, {transform_indices = @transform_3, window_bounds = array<i64: 1, 1, 128>}]} {
    %c0_i32 = arith.constant 0 : i32
    %0 = arith.cmpi eq, %arg1, %c0_i32 : i32
    %1 = arith.extui %0 : i1 to i32
    %c0_i32_0 = arith.constant 0 : i32
    %2 = arith.cmpi ne, %1, %c0_i32_0 : i32
    scf.if %2 {
      %cst_59 = arith.constant 0.000000e+00 : f32
      %178 = vector.broadcast %cst_59 : f32 to vector<1x1x128xf32>
      %c0_60 = arith.constant 0 : index
      %c0_61 = arith.constant 0 : index
      %c0_62 = arith.constant 0 : index
      %179 = vector.load %arg5[%c0_60, %c0_61, %c0_62] : memref<1x1x128xf32, #tpu.memory_space<vmem>>, vector<1x1x128xf32>
      tpu.vector_store %arg5[%c0_60, %c0_61, %c0_62], %178 {strides = array<i32>} : memref<1x1x128xf32, #tpu.memory_space<vmem>>, vector<1x1x128xf32>,
    } else {
    }
    %c0 = arith.constant 0 : index
    %c0_1 = arith.constant 0 : index
    %3 = vector.load %arg4[%c0, %c0_1] : memref<128x128xbf16, #tpu.memory_space<vmem>>, vector<128x128xbf16>
    %c0_2 = arith.constant 0 : index
    %c0_3 = arith.constant 0 : index
    %4 = vector.load %arg3[%c0_2, %c0_3] : memref<128x128xbf16, #tpu.memory_space<vmem>>, vector<128x128xbf16>
    %cst = arith.constant dense<0.000000e+00> : vector<128x128xf32>
    %5 = tpu.matmul %3, %4, %cst {dimension_numbers = #tpu.dot_dimension_numbers<[1], [0], [0], [1], [0, 0, 1, 1], [], []>} : vector<128x128xbf16>, vector<128x128xbf16>, vector<128x128xf32> -> vector<128x128xf32>
    %c128_i32 = arith.constant 128 : i32
    %6 = arith.muli %arg1, %c128_i32 : i32
    %7 = tpu.iota {dimensions = array<i32: 0>} : vector<128x1xi32>
    %c0_4 = arith.constant 0 : index
    %c0_5 = arith.constant 0 : index
    %8 = vector.load %arg2[%c0_4, %c0_5] : memref<4x128xi32, #tpu.memory_space<vmem>>, vector<4x128xi32>
    %cst_6 = arith.constant 0.000000e+00 : f32
    %9 = vector.broadcast %cst_6 : f32 to vector<1x128xf32>
    %10 = vector.extract_strided_slice %8 {offsets = [0, 0], sizes = [1, 128], strides = [1, 1]} : vector<4x128xi32> to vector<1x128xi32>
    %11 = vector.broadcast %6 : i32 to vector<1x128xi32>
    %12 = arith.subi %10, %11 : vector<1x128xi32>
    %cst_7 = arith.constant 0.000000e+00 : f32
    %13 = vector.broadcast %cst_7 : f32 to vector<1x128xf32>
    %c0_i32_8 = arith.constant 0 : i32
    %14 = vector.broadcast %c0_i32_8 : i32 to vector<128x1xi32>
    %15 = arith.addi %7, %14 : vector<128x1xi32>
    %16 = vector.broadcast %15 : vector<128x1xi32> to vector<128x128xi32>
    %17 = vector.broadcast %12 : vector<1x128xi32> to vector<128x128xi32>
    %18 = arith.cmpi eq, %16, %17 : vector<128x128xi32>
    %cst_9 = arith.constant 0.000000e+00 : f32
    %19 = vector.broadcast %cst_9 : f32 to vector<128x128xf32>
    %20 = arith.select %18, %5, %19 : vector<128x128xi1>, vector<128x128xf32>
    %cst_10 = arith.constant dense<0.000000e+00> : vector<128xf32>
    %21 = vector.multi_reduction <add>, %20, %cst_10 [0] : vector<128x128xf32> to vector<128xf32>
    %22 = vector.shape_cast %21 : vector<128xf32> to vector<1x128xf32>
    %23 = arith.addf %13, %22 : vector<1x128xf32>
    %c0_i32_11 = arith.constant 0 : i32
    %24 = vector.broadcast %c0_i32_11 : i32 to vector<1x128xi32>
    %25 = arith.cmpi sge, %12, %24 : vector<1x128xi32>
    %c128_i32_12 = arith.constant 128 : i32
    %26 = vector.broadcast %c128_i32_12 : i32 to vector<1x128xi32>
    %27 = arith.cmpi slt, %12, %26 : vector<1x128xi32>
    %28 = arith.andi %25, %27 : vector<1x128xi1>
    %29 = arith.extui %28 : vector<1x128xi1> to vector<1x128xi32>
    %30 = arith.sitofp %29 : vector<1x128xi32> to vector<1x128xf32>
    %c1_i32 = arith.constant 1 : i32
    %31 = vector.broadcast %c1_i32 : i32 to vector<1x128xi32>
    %32 = arith.andi %10, %31 : vector<1x128xi32>
    %c2_i32 = arith.constant 2 : i32
    %33 = vector.broadcast %c2_i32 : i32 to vector<1x128xi32>
    %34 = arith.muli %33, %32 : vector<1x128xi32>
    %c1_i32_13 = arith.constant 1 : i32
    %35 = vector.broadcast %c1_i32_13 : i32 to vector<1x128xi32>
    %36 = arith.subi %35, %34 : vector<1x128xi32>
    %37 = arith.sitofp %36 : vector<1x128xi32> to vector<1x128xf32>
    %38 = arith.mulf %37, %23 : vector<1x128xf32>
    %cst_14 = arith.constant 0.000000e+00 : f32
    %39 = vector.broadcast %cst_14 : f32 to vector<1x128xf32>
    %40 = arith.subf %39, %38 : vector<1x128xf32>
    %cst_15 = arith.constant 0.000000e+00 : f32
    %41 = vector.broadcast %cst_15 : f32 to vector<1x128xf32>
    %42 = arith.maximumf %40, %41 : vector<1x128xf32>
    %43 = math.absf %38 : vector<1x128xf32>
    %cst_16 = arith.constant 0.000000e+00 : f32
    %44 = vector.broadcast %cst_16 : f32 to vector<1x128xf32>
    %45 = arith.subf %44, %43 : vector<1x128xf32>
    %46 = math.exp %45 : vector<1x128xf32>
    %47 = math.log1p %46 : vector<1x128xf32>
    %48 = arith.addf %42, %47 : vector<1x128xf32>
    %49 = arith.mulf %30, %48 : vector<1x128xf32>
    %50 = arith.addf %9, %49 : vector<1x128xf32>
    %51 = vector.extract_strided_slice %8 {offsets = [1, 0], sizes = [1, 128], strides = [1, 1]} : vector<4x128xi32> to vector<1x128xi32>
    %52 = vector.broadcast %6 : i32 to vector<1x128xi32>
    %53 = arith.subi %51, %52 : vector<1x128xi32>
    %cst_17 = arith.constant 0.000000e+00 : f32
    %54 = vector.broadcast %cst_17 : f32 to vector<1x128xf32>
    %c0_i32_18 = arith.constant 0 : i32
    %55 = vector.broadcast %c0_i32_18 : i32 to vector<128x1xi32>
    %56 = arith.addi %7, %55 : vector<128x1xi32>
    %57 = vector.broadcast %56 : vector<128x1xi32> to vector<128x128xi32>
    %58 = vector.broadcast %53 : vector<1x128xi32> to vector<128x128xi32>
    %59 = arith.cmpi eq, %57, %58 : vector<128x128xi32>
    %cst_19 = arith.constant 0.000000e+00 : f32
    %60 = vector.broadcast %cst_19 : f32 to vector<128x128xf32>
    %61 = arith.select %59, %5, %60 : vector<128x128xi1>, vector<128x128xf32>
    %cst_20 = arith.constant dense<0.000000e+00> : vector<128xf32>
    %62 = vector.multi_reduction <add>, %61, %cst_20 [0] : vector<128x128xf32> to vector<128xf32>
    %63 = vector.shape_cast %62 : vector<128xf32> to vector<1x128xf32>
    %64 = arith.addf %54, %63 : vector<1x128xf32>
    %c0_i32_21 = arith.constant 0 : i32
    %65 = vector.broadcast %c0_i32_21 : i32 to vector<1x128xi32>
    %66 = arith.cmpi sge, %53, %65 : vector<1x128xi32>
    %c128_i32_22 = arith.constant 128 : i32
    %67 = vector.broadcast %c128_i32_22 : i32 to vector<1x128xi32>
    %68 = arith.cmpi slt, %53, %67 : vector<1x128xi32>
    %69 = arith.andi %66, %68 : vector<1x128xi1>
    %70 = arith.extui %69 : vector<1x128xi1> to vector<1x128xi32>
    %71 = arith.sitofp %70 : vector<1x128xi32> to vector<1x128xf32>
    %c1_i32_23 = arith.constant 1 : i32
    %72 = vector.broadcast %c1_i32_23 : i32 to vector<1x128xi32>
    %73 = arith.andi %51, %72 : vector<1x128xi32>
    %c2_i32_24 = arith.constant 2 : i32
    %74 = vector.broadcast %c2_i32_24 : i32 to vector<1x128xi32>
    %75 = arith.muli %74, %73 : vector<1x128xi32>
    %c1_i32_25 = arith.constant 1 : i32
    %76 = vector.broadcast %c1_i32_25 : i32 to vector<1x128xi32>
    %77 = arith.subi %76, %75 : vector<1x128xi32>
    %78 = arith.sitofp %77 : vector<1x128xi32> to vector<1x128xf32>
    %79 = arith.mulf %78, %64 : vector<1x128xf32>
    %cst_26 = arith.constant 0.000000e+00 : f32
    %80 = vector.broadcast %cst_26 : f32 to vector<1x128xf32>
    %81 = arith.subf %80, %79 : vector<1x128xf32>
    %cst_27 = arith.constant 0.000000e+00 : f32
    %82 = vector.broadcast %cst_27 : f32 to vector<1x128xf32>
    %83 = arith.maximumf %81, %82 : vector<1x128xf32>
    %84 = math.absf %79 : vector<1x128xf32>
    %cst_28 = arith.constant 0.000000e+00 : f32
    %85 = vector.broadcast %cst_28 : f32 to vector<1x128xf32>
    %86 = arith.subf %85, %84 : vector<1x128xf32>
    %87 = math.exp %86 : vector<1x128xf32>
    %88 = math.log1p %87 : vector<1x128xf32>
    %89 = arith.addf %83, %88 : vector<1x128xf32>
    %90 = arith.mulf %71, %89 : vector<1x128xf32>
    %91 = arith.addf %50, %90 : vector<1x128xf32>
    %92 = vector.extract_strided_slice %8 {offsets = [2, 0], sizes = [1, 128], strides = [1, 1]} : vector<4x128xi32> to vector<1x128xi32>
    %93 = vector.broadcast %6 : i32 to vector<1x128xi32>
    %94 = arith.subi %92, %93 : vector<1x128xi32>
    %cst_29 = arith.constant 0.000000e+00 : f32
    %95 = vector.broadcast %cst_29 : f32 to vector<1x128xf32>
    %c0_i32_30 = arith.constant 0 : i32
    %96 = vector.broadcast %c0_i32_30 : i32 to vector<128x1xi32>
    %97 = arith.addi %7, %96 : vector<128x1xi32>
    %98 = vector.broadcast %97 : vector<128x1xi32> to vector<128x128xi32>
    %99 = vector.broadcast %94 : vector<1x128xi32> to vector<128x128xi32>
    %100 = arith.cmpi eq, %98, %99 : vector<128x128xi32>
    %cst_31 = arith.constant 0.000000e+00 : f32
    %101 = vector.broadcast %cst_31 : f32 to vector<128x128xf32>
    %102 = arith.select %100, %5, %101 : vector<128x128xi1>, vector<128x128xf32>
    %cst_32 = arith.constant dense<0.000000e+00> : vector<128xf32>
    %103 = vector.multi_reduction <add>, %102, %cst_32 [0] : vector<128x128xf32> to vector<128xf32>
    %104 = vector.shape_cast %103 : vector<128xf32> to vector<1x128xf32>
    %105 = arith.addf %95, %104 : vector<1x128xf32>
    %c0_i32_33 = arith.constant 0 : i32
    %106 = vector.broadcast %c0_i32_33 : i32 to vector<1x128xi32>
    %107 = arith.cmpi sge, %94, %106 : vector<1x128xi32>
    %c128_i32_34 = arith.constant 128 : i32
    %108 = vector.broadcast %c128_i32_34 : i32 to vector<1x128xi32>
    %109 = arith.cmpi slt, %94, %108 : vector<1x128xi32>
    %110 = arith.andi %107, %109 : vector<1x128xi1>
    %111 = arith.extui %110 : vector<1x128xi1> to vector<1x128xi32>
    %112 = arith.sitofp %111 : vector<1x128xi32> to vector<1x128xf32>
    %c1_i32_35 = arith.constant 1 : i32
    %113 = vector.broadcast %c1_i32_35 : i32 to vector<1x128xi32>
    %114 = arith.andi %92, %113 : vector<1x128xi32>
    %c2_i32_36 = arith.constant 2 : i32
    %115 = vector.broadcast %c2_i32_36 : i32 to vector<1x128xi32>
    %116 = arith.muli %115, %114 : vector<1x128xi32>
    %c1_i32_37 = arith.constant 1 : i32
    %117 = vector.broadcast %c1_i32_37 : i32 to vector<1x128xi32>
    %118 = arith.subi %117, %116 : vector<1x128xi32>
    %119 = arith.sitofp %118 : vector<1x128xi32> to vector<1x128xf32>
    %120 = arith.mulf %119, %105 : vector<1x128xf32>
    %cst_38 = arith.constant 0.000000e+00 : f32
    %121 = vector.broadcast %cst_38 : f32 to vector<1x128xf32>
    %122 = arith.subf %121, %120 : vector<1x128xf32>
    %cst_39 = arith.constant 0.000000e+00 : f32
    %123 = vector.broadcast %cst_39 : f32 to vector<1x128xf32>
    %124 = arith.maximumf %122, %123 : vector<1x128xf32>
    %125 = math.absf %120 : vector<1x128xf32>
    %cst_40 = arith.constant 0.000000e+00 : f32
    %126 = vector.broadcast %cst_40 : f32 to vector<1x128xf32>
    %127 = arith.subf %126, %125 : vector<1x128xf32>
    %128 = math.exp %127 : vector<1x128xf32>
    %129 = math.log1p %128 : vector<1x128xf32>
    %130 = arith.addf %124, %129 : vector<1x128xf32>
    %131 = arith.mulf %112, %130 : vector<1x128xf32>
    %132 = arith.addf %91, %131 : vector<1x128xf32>
    %133 = vector.extract_strided_slice %8 {offsets = [3, 0], sizes = [1, 128], strides = [1, 1]} : vector<4x128xi32> to vector<1x128xi32>
    %134 = vector.broadcast %6 : i32 to vector<1x128xi32>
    %135 = arith.subi %133, %134 : vector<1x128xi32>
    %cst_41 = arith.constant 0.000000e+00 : f32
    %136 = vector.broadcast %cst_41 : f32 to vector<1x128xf32>
    %c0_i32_42 = arith.constant 0 : i32
    %137 = vector.broadcast %c0_i32_42 : i32 to vector<128x1xi32>
    %138 = arith.addi %7, %137 : vector<128x1xi32>
    %139 = vector.broadcast %138 : vector<128x1xi32> to vector<128x128xi32>
    %140 = vector.broadcast %135 : vector<1x128xi32> to vector<128x128xi32>
    %141 = arith.cmpi eq, %139, %140 : vector<128x128xi32>
    %cst_43 = arith.constant 0.000000e+00 : f32
    %142 = vector.broadcast %cst_43 : f32 to vector<128x128xf32>
    %143 = arith.select %141, %5, %142 : vector<128x128xi1>, vector<128x128xf32>
    %cst_44 = arith.constant dense<0.000000e+00> : vector<128xf32>
    %144 = vector.multi_reduction <add>, %143, %cst_44 [0] : vector<128x128xf32> to vector<128xf32>
    %145 = vector.shape_cast %144 : vector<128xf32> to vector<1x128xf32>
    %146 = arith.addf %136, %145 : vector<1x128xf32>
    %c0_i32_45 = arith.constant 0 : i32
    %147 = vector.broadcast %c0_i32_45 : i32 to vector<1x128xi32>
    %148 = arith.cmpi sge, %135, %147 : vector<1x128xi32>
    %c128_i32_46 = arith.constant 128 : i32
    %149 = vector.broadcast %c128_i32_46 : i32 to vector<1x128xi32>
    %150 = arith.cmpi slt, %135, %149 : vector<1x128xi32>
    %151 = arith.andi %148, %150 : vector<1x128xi1>
    %152 = arith.extui %151 : vector<1x128xi1> to vector<1x128xi32>
    %153 = arith.sitofp %152 : vector<1x128xi32> to vector<1x128xf32>
    %c1_i32_47 = arith.constant 1 : i32
    %154 = vector.broadcast %c1_i32_47 : i32 to vector<1x128xi32>
    %155 = arith.andi %133, %154 : vector<1x128xi32>
    %c2_i32_48 = arith.constant 2 : i32
    %156 = vector.broadcast %c2_i32_48 : i32 to vector<1x128xi32>
    %157 = arith.muli %156, %155 : vector<1x128xi32>
    %c1_i32_49 = arith.constant 1 : i32
    %158 = vector.broadcast %c1_i32_49 : i32 to vector<1x128xi32>
    %159 = arith.subi %158, %157 : vector<1x128xi32>
    %160 = arith.sitofp %159 : vector<1x128xi32> to vector<1x128xf32>
    %161 = arith.mulf %160, %146 : vector<1x128xf32>
    %cst_50 = arith.constant 0.000000e+00 : f32
    %162 = vector.broadcast %cst_50 : f32 to vector<1x128xf32>
    %163 = arith.subf %162, %161 : vector<1x128xf32>
    %cst_51 = arith.constant 0.000000e+00 : f32
    %164 = vector.broadcast %cst_51 : f32 to vector<1x128xf32>
    %165 = arith.maximumf %163, %164 : vector<1x128xf32>
    %166 = math.absf %161 : vector<1x128xf32>
    %cst_52 = arith.constant 0.000000e+00 : f32
    %167 = vector.broadcast %cst_52 : f32 to vector<1x128xf32>
    %168 = arith.subf %167, %166 : vector<1x128xf32>
    %169 = math.exp %168 : vector<1x128xf32>
    %170 = math.log1p %169 : vector<1x128xf32>
    %171 = arith.addf %165, %170 : vector<1x128xf32>
    %172 = arith.mulf %153, %171 : vector<1x128xf32>
    %173 = arith.addf %132, %172 : vector<1x128xf32>
    %c0_53 = arith.constant 0 : index
    %c0_54 = arith.constant 0 : index
    %c0_55 = arith.constant 0 : index
    %174 = vector.load %arg5[%c0_53, %c0_54, %c0_55] : memref<1x1x128xf32, #tpu.memory_space<vmem>>, vector<1x1x128xf32>
    %175 = vector.shape_cast %173 : vector<1x128xf32> to vector<1x1x128xf32>
    %176 = arith.addf %174, %175 : vector<1x1x128xf32>
    %c0_56 = arith.constant 0 : index
    %c0_57 = arith.constant 0 : index
    %c0_58 = arith.constant 0 : index
    %177 = vector.load %arg5[%c0_56, %c0_57, %c0_58] : memref<1x1x128xf32, #tpu.memory_space<vmem>>, vector<1x1x128xf32>
    tpu.vector_store %arg5[%c0_56, %c0_57, %c0_58], %176 {strides = array<i32>} : memref<1x1x128xf32, #tpu.memory_space<vmem>>, vector<1x1x128xf32>,
    return
  }
  func.func @transform_0(%arg0: i32, %arg1: i32) -> (i32, i32) {
    %c0_i32 = arith.constant 0 : i32
    %c0_i32_0 = arith.constant 0 : i32
    return %c0_i32, %arg0 : i32, i32
  }
  func.func @transform_1(%arg0: i32, %arg1: i32) -> (i32, i32) {
    %c0_i32 = arith.constant 0 : i32
    %c0_i32_0 = arith.constant 0 : i32
    return %c0_i32, %arg0 : i32, i32
  }
  func.func @transform_2(%arg0: i32, %arg1: i32) -> (i32, i32) {
    %c0_i32 = arith.constant 0 : i32
    %c0_i32_0 = arith.constant 0 : i32
    return %arg1, %c0_i32 : i32, i32
  }
  func.func @transform_3(%arg0: i32, %arg1: i32) -> (i32, i32, i32) {
    %c0_i32 = arith.constant 0 : i32
    %c0_i32_0 = arith.constant 0 : i32
    %c0_i32_1 = arith.constant 0 : i32
    return %arg0, %c0_i32, %c0_i32_0 : i32, i32, i32
  }
}

</mosaic_0001>

<bundles_post_ra>
// kernel: tpu_custom_call.1
= control target key start
LH: loop header
LB: loop body
LE: loop exit
PB: predicated region body
PF: predicated region fallthrough
CT: control target
= control target key end

     0   :  { %8 = vsyncpa [#allocation3], 0  ;;  %s1307_s0 = inlined_call_operand.hbm [shape: s32[4,128], index: 0, kind: input, shape index: {}]   ;;  %s1308_s1 = inlined_call_operand.hbm [shape: bf16[128,128], index: 1, kind: input, shape index: {}]   ;;  %s1309_s2 = inlined_call_operand.hbm [shape: bf16[128,128], index: 2, kind: input, shape index: {}]   ;;  %s1310_s3 = inlined_call_operand.hbm [shape: f32[1,1,128], index: 3, kind: output, shape index: {}]  }
   0x1   :  { %9 = vsyncpa [#allocation6], 0  ;;  %s26_s14 = sshll.u32 %s1308_s1, 4  ;;  %s27_s14 = int_to_ptr.hbm [resolvable:$true] %s26_s14 }
   0x2   :  { %10 = vsyncpa [#allocation4], 0  ;;  %s828_s15 = smov [#allocation5]   ;;  %s16_s19 = sshll.u32 %s1307_s0, 4  ;;  %s17_s19 = int_to_ptr.hbm [resolvable:$true] %s16_s19 }
   0x3   :  { %s28_s16 = sshll.u32 %s828_s15, 4  ;;  %s829_s20 = smov 64   ;;  %s29_s16 = int_to_ptr.vmem [resolvable:$true] %s28_s16 }
   0x4   :  { %s830_s21 = smov 4   ;;  %s831_s22 = smov [#allocation2]  }
   0x5   :  { %34 = dma.hbm_to_vmem [thread:$0]  %s27_s14, 1024, %s29_s16, [#allocation6], %s829_s20, %s829_s20, %s830_s21  }
   0x6   :  { %s18_s23 = sshll.u32 %s831_s22, 4  ;;  %s39_s26 = sshll.u32 %s1309_s2, 4  ;;  %s19_s23 = int_to_ptr.vmem [resolvable:$true] %s18_s23  ;;  %s40_s26 = int_to_ptr.hbm [resolvable:$true] %s39_s26 }
   0x7   :  { %21 = dma.hbm_to_vmem [thread:$0]  %s17_s19, 64, %s19_s23, [#allocation3]  }
   0x8   :  { %s832_s1 = smov [#allocation7]  }
   0x9   :  { %s41_s27 = sshll.u32 %s832_s1, 4  ;;  %s42_s27 = int_to_ptr.vmem [resolvable:$true] %s41_s27 }
   0xa   :  { %47 = dma.hbm_to_vmem [thread:$0]  %s40_s26, 1024, %s42_s27, [#allocation6], %s829_s20, %s829_s20, %s830_s21  }
   0xb   :  { %822 = dma.done.wait [#allocation3], 64  }
   0xc   :  { %823 = vsyncadd [#allocation3], 4294967232 }
   0xd   :  { %824 = dma.done.wait [#allocation6], 2048  }
   0xe   :  { %825 = vsyncadd [#allocation6], 4294965248  ;;  %v678_v0 = vld [vmem:[#allocation5 + $0x38] sm:$0xff]  ;;  %v677_v1 = vld [vmem:[#allocation5 + $0x30] sm:$0xff]  ;;  %v243_v17 = vlaneseq  ;;  %s834_s0 = smov [#allocation8]   ;;  %s587_s30 = sshll.u32 %s1310_s3, 4  ;;  %s588_s30 = int_to_ptr.hbm [resolvable:$true] %s587_s30 }
   0xf   :  { %193 = vmatpush.bf16.msra.mxu0 %v678_v0  ;;  %679 = vmatpush.bf16.msra.mxu1 %v678_v0  ;;  %v676_v2 = vld [vmem:[#allocation5 + $0x28] sm:$0xff]  ;;  %v675_v3 = vld [vmem:[#allocation5 + $0x20] sm:$0xff]  ;;  %v674_v4 = vld [vmem:[#allocation5 + $0x18] sm:$0xff]  ;;  %s585_s2 = sshll.u32 %s834_s0, 4  ;;  %s586_s2 = int_to_ptr.vmem [resolvable:$true] %s585_s2 }
  0x10   :  { %680 = vmatpush.bf16.msra.mxu2 %v678_v0  ;;  %681 = vmatpush.bf16.msra.mxu3 %v678_v0  ;;  %v673_v5 = vld [vmem:[#allocation5 + $0x10] sm:$0xff]  ;;  %v672_v6 = vld [vmem:[#allocation5 + $0x8] sm:$0xff]  ;;  %v671_v7 = vld [vmem:[#allocation5] sm:$0xff]  ;;  %v868_v20 = vshrl.u32 %v243_v17, 7 }
  0x11   :  { %v663_v8 = vld [vmem:[#allocation7] sm:$0xff]  ;;  %v665_v9 = vld [vmem:[#allocation7 + $0x10] sm:$0xff]  ;;  %v664_v12 = vld [vmem:[#allocation7 + $0x8] sm:$0xff] }
  0x12   :  { %v667_v10 = vld [vmem:[#allocation7 + $0x20] sm:$0xff]  ;;  %v669_v11 = vld [vmem:[#allocation7 + $0x30] sm:$0xff]  ;;  %v666_v13 = vld [vmem:[#allocation7 + $0x18] sm:$0xff]  ;;  %v883_v25 = vadd.s32 32, %v868_v20  ;;  %v245_v26 = vadd.s32 8, %v868_v20  ;;  %v895_v29 = vadd.s32 40, %v868_v20 }
  0x13   :  { %194 = vmatpush.bf16.msra.mxu0 %v677_v1  ;;  %682 = vmatpush.bf16.msra.mxu1 %v677_v1  ;;  %v668_v14 = vld [vmem:[#allocation7 + $0x28] sm:$0xff]  ;;  %v670_v15 = vld [vmem:[#allocation7 + $0x38] sm:$0xff]  ;;  %v898_v30 = vadd.s32 64, %v868_v20  ;;  %v246_v32 = vadd.s32 16, %v868_v20  ;;  %v918_v33 = vadd.s32 96, %v868_v20  ;;  %v921_v34 = vadd.s32 24, %v868_v20 }
  0x14   :  { %683 = vmatpush.bf16.msra.mxu2 %v677_v1  ;;  %684 = vmatpush.bf16.msra.mxu3 %v677_v1  ;;  %v866_v19 = vld [vmem:[#allocation2] sm:$0xf]  ;;  %v935_v35 = vadd.s32 48, %v868_v20  ;;  %v938_v36 = vadd.s32 72, %v868_v20  ;;  %v944_v37 = vadd.s32 56, %v868_v20  ;;  %v963_v40 = vadd.s32 104, %v868_v20 }
  0x15   :  { %v871_v21 = vperm.slane %v866_v19, 0  ;;  %v874_v22 = vperm.slane %v866_v19, 1  ;;  %v877_v23 = vperm.slane %v866_v19, 2  ;;  %v880_v24 = vperm.slane %v866_v19, 3 }
  0x16   :  { %v971_v42 = vadd.s32 80, %v868_v20  ;;  %v974_v43 = vadd.s32 88, %v868_v20 }
  0x17   :  { %195 = vmatpush.bf16.msra.mxu0 %v676_v2  ;;  %685 = vmatpush.bf16.msra.mxu1 %v676_v2  ;;  %vm264_vm0 = vcmp.eq.s32.totalorder %v868_v20, %v871_v21  ;;  %vm347_vm1 = vcmp.eq.s32.totalorder %v868_v20, %v874_v22  ;;  %vm424_vm2 = vcmp.eq.s32.totalorder %v868_v20, %v877_v23 }
  0x18   :  { %686 = vmatpush.bf16.msra.mxu2 %v676_v2  ;;  %687 = vmatpush.bf16.msra.mxu3 %v676_v2  ;;  %vm501_vm3 = vcmp.eq.s32.totalorder %v868_v20, %v880_v24  ;;  %vm268_vm4 = vcmp.eq.s32.totalorder %v883_v25, %v871_v21  ;;  %vm351_vm5 = vcmp.eq.s32.totalorder %v883_v25, %v874_v22 }
  0x19   :  { %vm265_vm8 = vcmp.eq.s32.totalorder %v245_v26, %v871_v21  ;;  %vm348_vm9 = vcmp.eq.s32.totalorder %v245_v26, %v874_v22  ;;  %vm425_vm10 = vcmp.eq.s32.totalorder %v245_v26, %v877_v23  ;;  %vm502_vm11 = vcmp.eq.s32.totalorder %v245_v26, %v880_v24 }
  0x1a   :  { %vm429_vm15 = vcmp.eq.s32.totalorder %v895_v29, %v877_v23  ;;  %vm276_vm13 = vcmp.eq.s32.totalorder %v918_v33, %v871_v21  ;;  %vm267_vm14 = vcmp.eq.s32.totalorder %v921_v34, %v871_v21  ;;  %vm350_vm12 = vcmp.eq.s32.totalorder %v921_v34, %v874_v22 }
  0x1b   :  { %196 = vmatpush.bf16.msra.mxu0 %v675_v3  ;;  %688 = vmatpush.bf16.msra.mxu1 %v675_v3  ;;  %vm427_vm7 = vcmp.eq.s32.totalorder %v921_v34, %v877_v23  ;;  %vm504_vm6 = vcmp.eq.s32.totalorder %v921_v34, %v880_v24 }
  0x1c   :  { %689 = vmatpush.bf16.msra.mxu2 %v675_v3  ;;  %690 = vmatpush.bf16.msra.mxu3 %v675_v3 }
  0x1f   :  { %197 = vmatpush.bf16.msra.mxu0 %v674_v4  ;;  %691 = vmatpush.bf16.msra.mxu1 %v674_v4 }
  0x20   :  { %692 = vmatpush.bf16.msra.mxu2 %v674_v4  ;;  %693 = vmatpush.bf16.msra.mxu3 %v674_v4 }
  0x23   :  { %198 = vmatpush.bf16.msra.mxu0 %v673_v5  ;;  %694 = vmatpush.bf16.msra.mxu1 %v673_v5 }
  0x24   :  { %695 = vmatpush.bf16.msra.mxu2 %v673_v5  ;;  %696 = vmatpush.bf16.msra.mxu3 %v673_v5 }
  0x27   :  { %199 = vmatpush.bf16.msra.mxu0 %v672_v6  ;;  %697 = vmatpush.bf16.msra.mxu1 %v672_v6 }
  0x28   :  { %698 = vmatpush.bf16.msra.mxu2 %v672_v6  ;;  %699 = vmatpush.bf16.msra.mxu3 %v672_v6 }
  0x2b   :  { %200 = vmatpush.bf16.msra.mxu0 %v671_v7  ;;  %700 = vmatpush.bf16.msra.mxu1 %v671_v7 }
  0x2c   :  { %701 = vmatpush.bf16.msra.mxu2 %v671_v7  ;;  %702 = vmatpush.bf16.msra.mxu3 %v671_v7 }
  0x2e   :  { %201 = vmatmul.bf16.vlgmr.msra.gmra.mxu0 %v663_v8  ;;  %211 = vmatmul.bf16.vlgmr.msra.gmra.mxu1 %v665_v9 }
  0x2f   :  { %221 = vmatmul.bf16.vlgmr.msra.gmra.mxu2 %v667_v10  ;;  %231 = vmatmul.bf16.vlgmr.msra.gmra.mxu3 %v669_v11 }
  0x3e   :  { %206 = vmatmul.bf16.gmra.mxu0 %v664_v12  ;;  %216 = vmatmul.bf16.gmra.mxu1 %v666_v13 }
  0x3f   :  { %226 = vmatmul.bf16.gmra.mxu2 %v668_v14  ;;  %236 = vmatmul.bf16.gmra.mxu3 %v670_v15 }
  0xab   :  { %v202_v16 = vpop.f32.mrf.mxu0  ;;  %v864_v18 = vpop.f32.mrf.mxu1 }
  0xac   :  { %v280_v41 = vsel %vm264_vm0, %v202_v16, 0.0  ;;  %v363_v44 = vsel %vm347_vm1, %v202_v16, 0.0  ;;  %v440_v45 = vsel %vm424_vm2, %v202_v16, 0.0  ;;  %v517_v46 = vsel %vm501_vm3, %v202_v16, 0.0 }
  0xad   :  { %v284_v47 = vsel %vm268_vm4, %v864_v18, 0.0  ;;  %vm359_vm0 = vcmp.eq.s32.totalorder %v918_v33, %v874_v22  ;;  %vm436_vm1 = vcmp.eq.s32.totalorder %v918_v33, %v877_v23  ;;  %vm513_vm2 = vcmp.eq.s32.totalorder %v918_v33, %v880_v24 }
  0xae   :  { %v367_v53 = vsel %vm351_vm5, %v864_v18, 0.0  ;;  %vm1311_vm3 = vcmp.eq.s32.totalorder %v883_v25, %v877_v23  ;;  %vm1312_vm4 = vcmp.eq.s32.totalorder %v883_v25, %v880_v24  ;;  %vm1317_vm5 = vcmp.eq.s32.totalorder %v246_v32, %v880_v24 }
  0xaf   :  { %v444_v54 = vsel %vm1311_vm3, %v864_v18, 0.0  ;;  %v521_v55 = vsel %vm1312_vm4, %v864_v18, 0.0  ;;  %vm1314_vm3 = vcmp.eq.s32.totalorder %v246_v32, %v871_v21  ;;  %vm1315_vm4 = vcmp.eq.s32.totalorder %v246_v32, %v874_v22 }
  0xb2   :  { %v888_v28 = vpop.f32.mrf.mxu2  ;;  %v952_v39 = vpop.f32.mrf.mxu3 }
  0xb3   :  { %v204_v27 = vpop.f32.mrf.mxu0  ;;  %v906_v31 = vpop.f32.mrf.mxu1 }
  0xb4   :  { %v281_v49 = vsel %vm265_vm8, %v204_v27, 0.0  ;;  %v364_v50 = vsel %vm348_vm9, %v204_v27, 0.0  ;;  %v441_v51 = vsel %vm425_vm10, %v204_v27, 0.0  ;;  %v518_v52 = vsel %vm502_vm11, %v204_v27, 0.0 }
  0xb5   :  { %vm1313_vm8 = vcmp.eq.s32.totalorder %v898_v30, %v871_v21  ;;  %vm353_vm9 = vcmp.eq.s32.totalorder %v935_v35, %v874_v22  ;;  %v296_v62 = vadd.f32 %v281_v49, %v280_v41  ;;  %v379_v63 = vadd.f32 %v364_v50, %v363_v44 }
  0xb6   :  { %v1021_v56 = vsel %vm1313_vm8, %v888_v28, 0.0  ;;  %vm1316_vm8 = vcmp.eq.s32.totalorder %v246_v32, %v877_v23  ;;  %v456_v0 = vadd.f32 %v441_v51, %v440_v45  ;;  %v533_v1 = vadd.f32 %v518_v52, %v517_v46 }
  0xb7   :  { %vm271_vm10 = vcmp.eq.s32.totalorder %v944_v37, %v871_v21  ;;  %vm1320_vm11 = vcmp.eq.s32.totalorder %v898_v30, %v877_v23  ;;  %v445_v27 = vsel %vm429_vm15, %v906_v31, 0.0  ;;  %vm357_vm15 = vcmp.eq.s32.totalorder %v971_v42, %v874_v22 }
  0xb8   :  { %v1063_v4 = vsel %vm1320_vm11, %v888_v28, 0.0  ;;  %vm433_vm11 = vcmp.eq.s32.totalorder %v938_v36, %v877_v23  ;;  %v1139_v45 = vsel %vm513_vm2, %v952_v39, 0.0  ;;  %v1142_v46 = vadd.s32 112, %v868_v20 }
  0xb9   :  { %vm1329_vm2 = vcmp.eq.s32.totalorder %v944_v37, %v880_v24 }
  0xba   :  { %v989_v48 = vpop.f32.mrf.mxu2  ;;  %v1091_v25 = vpop.f32.mrf.mxu3 }
  0xbb   :  { %v207_v38 = vpop.f32.mrf.mxu0  ;;  %v1023_v57 = vpop.f32.mrf.mxu1 }
  0xbc   :  { %v282_v58 = vsel %vm1314_vm3, %v207_v38, 0.0  ;;  %v365_v59 = vsel %vm1315_vm4, %v207_v38, 0.0  ;;  %v442_v60 = vsel %vm1316_vm8, %v207_v38, 0.0  ;;  %v519_v61 = vsel %vm1317_vm5, %v207_v38, 0.0 }
  0xbd   :  { %vm1318_vm5 = vcmp.eq.s32.totalorder %v895_v29, %v871_v21  ;;  %vm1319_vm8 = vcmp.eq.s32.totalorder %v898_v30, %v874_v22  ;;  %vm1321_vm4 = vcmp.eq.s32.totalorder %v898_v30, %v880_v24  ;;  %vm356_vm3 = vcmp.eq.s32.totalorder %v938_v36, %v874_v22 }
  0xbe   :  { %v285_v2 = vsel %vm1318_vm5, %v906_v31, 0.0  ;;  %v1057_v3 = vsel %vm1319_vm8, %v888_v28, 0.0  ;;  %v1069_v5 = vsel %vm1321_vm4, %v888_v28, 0.0  ;;  %vm273_vm5 = vcmp.eq.s32.totalorder %v938_v36, %v871_v21 }
  0xbf   :  { %v297_v7 = vadd.f32 %v296_v62, %v282_v58  ;;  %v380_v8 = vadd.f32 %v379_v63, %v365_v59  ;;  %v457_v9 = vadd.f32 %v456_v0, %v442_v60  ;;  %v534_v10 = vadd.f32 %v533_v1, %v519_v61 }
  0xc0   :  { %vm510_vm4 = vcmp.eq.s32.totalorder %v938_v36, %v880_v24  ;;  %v1113_v30 = vsel %vm276_vm13, %v952_v39, 0.0  ;;  %vm274_vm8 = vcmp.eq.s32.totalorder %v971_v42, %v871_v21  ;;  %vm275_vm13 = vcmp.eq.s32.totalorder %v974_v43, %v871_v21 }
  0xc2   :  { %v227_v44 = vpop.f32.mrf.mxu2 }
  0xc3   :  { %v209_v6 = vpop.f32.mrf.mxu0  ;;  %v290_v36 = vsel %vm274_vm8, %v227_v44, 0.0 }
  0xc4   :  { %v283_v11 = vsel %vm267_vm14, %v209_v6, 0.0  ;;  %v366_v12 = vsel %vm350_vm12, %v209_v6, 0.0  ;;  %v443_v13 = vsel %vm427_vm7, %v209_v6, 0.0  ;;  %v520_v14 = vsel %vm504_vm6, %v209_v6, 0.0 }
  0xc5   :  { %v298_v15 = vadd.f32 %v297_v7, %v283_v11  ;;  %v381_v16 = vadd.f32 %v380_v8, %v366_v12  ;;  %v458_v17 = vadd.f32 %v457_v9, %v443_v13  ;;  %v535_v18 = vadd.f32 %v534_v10, %v520_v14  ;;  %v237_v12 = vpop.f32.mrf.mxu3 }
  0xc6   :  { %vm277_vm12 = vcmp.eq.s32.totalorder %v963_v40, %v871_v21  ;;  %vm360_vm7 = vcmp.eq.s32.totalorder %v963_v40, %v874_v22  ;;  %vm1322_vm6 = vcmp.eq.s32.totalorder %v895_v29, %v874_v22  ;;  %vm1323_vm14 = vcmp.eq.s32.totalorder %v895_v29, %v880_v24 }
  0xc7   :  { %v368_v26 = vsel %vm1322_vm6, %v906_v31, 0.0  ;;  %v522_v28 = vsel %vm1323_vm14, %v906_v31, 0.0  ;;  %v299_v32 = vadd.f32 %v298_v15, %v284_v47  ;;  %v382_v34 = vadd.f32 %v381_v16, %v367_v53  ;;  %v219_v47 = vpop.f32.mrf.mxu1 }
  0xc8   :  { %v459_v38 = vadd.f32 %v458_v17, %v444_v54  ;;  %v536_v41 = vadd.f32 %v535_v18, %v521_v55  ;;  %vm434_vm6 = vcmp.eq.s32.totalorder %v971_v42, %v877_v23  ;;  %v1127_v29 = vsel %vm359_vm0, %v952_v39, 0.0 }
  0xc9   :  { %v1133_v31 = vsel %vm436_vm1, %v952_v39, 0.0  ;;  %v300_v49 = vadd.f32 %v299_v32, %v285_v2  ;;  %v383_v50 = vadd.f32 %v382_v34, %v368_v26  ;;  %vm1324_vm14 = vcmp.eq.s32.totalorder %v935_v35, %v871_v21 }
  0xca   :  { %v460_v51 = vadd.f32 %v459_v38, %v445_v27  ;;  %v537_v52 = vadd.f32 %v536_v41, %v522_v28  ;;  %v286_v33 = vsel %vm1324_vm14, %v1023_v57, 0.0  ;;  %v369_v39 = vsel %vm353_vm9, %v1023_v57, 0.0 }
  0xcb   :  { %vm1325_vm0 = vcmp.eq.s32.totalorder %v935_v35, %v877_v23  ;;  %vm1326_vm1 = vcmp.eq.s32.totalorder %v935_v35, %v880_v24  ;;  %v301_v55 = vadd.f32 %v300_v49, %v286_v33  ;;  %v384_v58 = vadd.f32 %v383_v50, %v369_v39 }
  0xcc   :  { %v446_v53 = vsel %vm1325_vm0, %v1023_v57, 0.0  ;;  %v523_v54 = vsel %vm1326_vm1, %v1023_v57, 0.0  ;;  %vm437_vm14 = vcmp.eq.s32.totalorder %v963_v40, %v877_v23  ;;  %vm514_vm9 = vcmp.eq.s32.totalorder %v963_v40, %v880_v24 }
  0xcd   :  { %v461_v59 = vadd.f32 %v460_v51, %v446_v53  ;;  %v538_v60 = vadd.f32 %v537_v52, %v523_v54  ;;  %v287_v61 = vsel %vm271_vm10, %v219_v47, 0.0  ;;  %vm1327_vm0 = vcmp.eq.s32.totalorder %v944_v37, %v874_v22  ;;  %v239_v40 = vpop.f32.mrf.mxu3 }
  0xce   :  { %v370_v62 = vsel %vm1327_vm0, %v219_v47, 0.0  ;;  %vm1328_vm1 = vcmp.eq.s32.totalorder %v944_v37, %v877_v23  ;;  %v524_v57 = vsel %vm1329_vm2, %v219_v47, 0.0  ;;  %v302_v63 = vadd.f32 %v301_v55, %v287_v61 }
  0xcf   :  { %v447_v35 = vsel %vm1328_vm1, %v219_v47, 0.0  ;;  %v385_v0 = vadd.f32 %v384_v58, %v370_v62  ;;  %v539_v2 = vadd.f32 %v538_v60, %v524_v57  ;;  %v289_v6 = vsel %vm273_vm5, %v989_v48, 0.0 }
  0xd0   :  { %v462_v1 = vadd.f32 %v461_v59, %v447_v35  ;;  %v372_v7 = vsel %vm356_vm3, %v989_v48, 0.0  ;;  %vm278_vm10 = vcmp.eq.s32.totalorder %v1142_v46, %v871_v21  ;;  %v1195_v37 = vadd.s32 120, %v868_v20 }
  0xd1   :  { %v303_v8 = vadd.f32 %v302_v63, %v1021_v56  ;;  %v386_v9 = vadd.f32 %v385_v0, %v1057_v3  ;;  %v540_v11 = vadd.f32 %v539_v2, %v1069_v5  ;;  %vm361_vm5 = vcmp.eq.s32.totalorder %v1142_v46, %v874_v22  ;;  %v229_v5 = vpop.f32.mrf.mxu2 }
  0xd2   :  { %v463_v10 = vadd.f32 %v462_v1, %v1063_v4  ;;  %vm438_vm3 = vcmp.eq.s32.totalorder %v1142_v46, %v877_v23  ;;  %vm515_vm2 = vcmp.eq.s32.totalorder %v1142_v46, %v880_v24  ;;  %v449_v20 = vsel %vm433_vm11, %v989_v48, 0.0 }
  0xd3   :  { %v526_v56 = vsel %vm510_vm4, %v989_v48, 0.0  ;;  %v293_v3 = vsel %vm277_vm12, %v1091_v25, 0.0  ;;  %v376_v4 = vsel %vm360_vm7, %v1091_v25, 0.0  ;;  %v304_v13 = vadd.f32 %v303_v8, %v289_v6 }
  0xd4   :  { %v387_v14 = vadd.f32 %v386_v9, %v372_v7  ;;  %v464_v15 = vadd.f32 %v463_v10, %v449_v20  ;;  %v541_v16 = vadd.f32 %v540_v11, %v526_v56  ;;  %v373_v48 = vsel %vm357_vm15, %v227_v44, 0.0 }
  0xd5   :  { %v450_v17 = vsel %vm434_vm6, %v227_v44, 0.0  ;;  %vm1330_vm11 = vcmp.eq.s32.totalorder %v971_v42, %v880_v24  ;;  %v305_v26 = vadd.f32 %v304_v13, %v290_v36  ;;  %v291_v34 = vsel %vm275_vm13, %v229_v5, 0.0 }
  0xd6   :  { %v527_v18 = vsel %vm1330_vm11, %v227_v44, 0.0  ;;  %v388_v27 = vadd.f32 %v387_v14, %v373_v48  ;;  %v465_v28 = vadd.f32 %v464_v15, %v450_v17  ;;  %vm1331_vm4 = vcmp.eq.s32.totalorder %v974_v43, %v874_v22 }
  0xd7   :  { %v542_v32 = vadd.f32 %v541_v16, %v527_v18  ;;  %v374_v38 = vsel %vm1331_vm4, %v229_v5, 0.0  ;;  %vm1332_vm12 = vcmp.eq.s32.totalorder %v974_v43, %v877_v23  ;;  %vm1333_vm7 = vcmp.eq.s32.totalorder %v974_v43, %v880_v24 }
  0xd8   :  { %v451_v41 = vsel %vm1332_vm12, %v229_v5, 0.0  ;;  %v528_v42 = vsel %vm1333_vm7, %v229_v5, 0.0  ;;  %v306_v44 = vadd.f32 %v305_v26, %v291_v34  ;;  %v389_v47 = vadd.f32 %v388_v27, %v374_v38 }
  0xd9   :  { %v466_v49 = vadd.f32 %v465_v28, %v451_v41  ;;  %v543_v50 = vadd.f32 %v542_v32, %v528_v42  ;;  %v453_v51 = vsel %vm437_vm14, %v1091_v25, 0.0  ;;  %v530_v52 = vsel %vm514_vm9, %v1091_v25, 0.0 }
  0xda   :  { %vm279_vm8 = vcmp.eq.s32.totalorder %v1195_v37, %v871_v21  ;;  %v307_v43 = vadd.f32 %v306_v44, %v1113_v30  ;;  %v390_v33 = vadd.f32 %v389_v47, %v1127_v29  ;;  %v833_v54 = vmov 0.0  }
  0xdb   :  { %v467_v39 = vadd.f32 %v466_v49, %v1133_v31  ;;  %v544_v53 = vadd.f32 %v543_v50, %v1139_v45  ;;  %64 = vst [vmem:[#allocation8] sm:$0x1] %v833_v54  ;;  %v294_v55 = vsel %vm278_vm10, %v237_v12, 0.0  ;;  %vm362_vm15 = vcmp.eq.s32.totalorder %v1195_v37, %v874_v22 }
  0xdc   :  { %vm439_vm6 = vcmp.eq.s32.totalorder %v1195_v37, %v877_v23  ;;  %vm516_vm13 = vcmp.eq.s32.totalorder %v1195_v37, %v880_v24  ;;  %v308_v25 = vadd.f32 %v307_v43, %v293_v3  ;;  %v391_v30 = vadd.f32 %v390_v33, %v376_v4 }
  0xdd   :  { %v468_v29 = vadd.f32 %v467_v39, %v453_v51  ;;  %v545_v31 = vadd.f32 %v544_v53, %v530_v52  ;;  %v377_v45 = vsel %vm361_vm5, %v237_v12, 0.0  ;;  %v454_v58 = vsel %vm438_vm3, %v237_v12, 0.0 }
  0xde   :  { %v531_v59 = vsel %vm515_vm2, %v237_v12, 0.0  ;;  %v323_v60 = vand.u32 1, %v866_v19  ;;  %v309_v61 = vadd.f32 %v308_v25, %v294_v55  ;;  %v392_v62 = vadd.f32 %v391_v30, %v377_v45 }
  0xdf   :  { %v469_v35 = vadd.f32 %v468_v29, %v454_v58  ;;  %v546_v57 = vadd.f32 %v545_v31, %v531_v59  ;;  %v295_v63 = vsel %vm279_vm8, %v239_v40, 0.0  ;;  %v378_v0 = vsel %vm362_vm15, %v239_v40, 0.0 }
  0xe0   :  { %v455_v1 = vsel %vm439_vm6, %v239_v40, 0.0  ;;  %v532_v46 = vsel %vm516_vm13, %v239_v40, 0.0  ;;  %v310_v2 = vadd.f32 %v309_v61, %v295_v63  ;;  %v393_v6 = vadd.f32 %v392_v62, %v378_v0 }
  0xe1   :  { %v470_v7 = vadd.f32 %v469_v35, %v455_v1  ;;  %v547_v8 = vadd.f32 %v546_v57, %v532_v46  ;;  %v324_v9 = vmul.u32 2, %v323_v60  ;;  %vm318_vm14 = vcmp.ge.s32.totalorder %v866_v19, 0 }
  0xe2   :  { %v311_v10 = vrot.slane %v310_v2, 4  ;;  %v394_v21 = vrot.slane %v393_v6, 4  ;;  %vm319_vm9 = vcmp.lt.s32.totalorder %v866_v19, 128 }
  0xe3   :  { %v471_v11 = vrot.slane %v470_v7, 4  ;;  %v548_v12 = vrot.slane %v547_v8, 4  ;;  %v325_v4 = vsub.s32 1, %v324_v9  ;;  %vm320_vm0 = vmand %vm318_vm14, %vm319_vm9 }
  0xe4   :  { %v312_v20 = vadd.f32 %v311_v10, %v310_v2  ;;  %v395_v22 = vadd.f32 %v394_v21, %v393_v6  ;;  %v662_v19 = vsel %vm320_vm0, 1.0, %v833_v54 }
  0xe5   :  { %v472_v56 = vadd.f32 %v471_v11, %v470_v7  ;;  %v549_v3 = vadd.f32 %v548_v12, %v547_v8  ;;  %v326_v36 = vcvt.s32.f32 %v325_v4 }
  0xe6   :  { %v313_v23 = vrot.slane %v312_v20, 2  ;;  %v396_v5 = vrot.slane %v395_v22, 2 }
  0xe7   :  { %v473_v13 = vrot.slane %v472_v56, 2  ;;  %v550_v14 = vrot.slane %v549_v3, 2 }
  0xe8   :  { %v314_v24 = vadd.f32 %v313_v23, %v312_v20  ;;  %v397_v37 = vadd.f32 %v396_v5, %v395_v22 }
  0xe9   :  { %v474_v15 = vadd.f32 %v473_v13, %v472_v56  ;;  %v551_v16 = vadd.f32 %v550_v14, %v549_v3 }
  0xea   :  { %v315_v48 = vrot.slane %v314_v24, 1  ;;  %v398_v17 = vrot.slane %v397_v37, 1 }
  0xeb   :  { %v475_v18 = vrot.slane %v474_v15, 1  ;;  %v552_v26 = vrot.slane %v551_v16, 1 }
  0xec   :  { %v316_v27 = vadd.f32 %v315_v48, %v314_v24  ;;  %v399_v28 = vadd.f32 %v398_v17, %v397_v37 }
  0xed   :  { %v476_v32 = vadd.f32 %v475_v18, %v474_v15  ;;  %v553_v34 = vadd.f32 %v552_v26, %v551_v16 }
  0xee   :  { %v327_v38 = vmul.f32 %v326_v36, %v316_v27  ;;  %v401_v41 = vmul.f32 %v399_v28, %v326_v36 }
  0xef   :  { %v1293_v42 = vmul.f32 %v476_v32, %v326_v36  ;;  %v1295_v44 = vmul.f32 %v553_v34, %v326_v36 }
  0xf0   :  { %v330_v47 = vand.u32 2147483647, %v327_v38  ;;  %v404_v49 = vand.u32 2147483647, %v401_v41  ;;  %v328_v63 = vsub.f32 0.0, %v327_v38  ;;  %v402_v0 = vsub.f32 0.0, %v401_v41 }
  0xf1   :  { %v481_v50 = vand.u32 2147483647, %v1293_v42  ;;  %v558_v51 = vand.u32 2147483647, %v1295_v44  ;;  %v479_v10 = vsub.f32 0.0, %v1293_v42  ;;  %v556_v21 = vsub.f32 0.0, %v1295_v44 }
  0xf2   :  { %v331_v52 = vsub.f32 0.0, %v330_v47  ;;  %v405_v43 = vsub.f32 0.0, %v404_v49  ;;  %v329_v22 = vmax.f32 %v328_v63, 0.0  ;;  %v403_v56 = vmax.f32 %v402_v0, 0.0 }
  0xf3   :  { %v482_v33 = vsub.f32 0.0, %v481_v50  ;;  %v559_v39 = vsub.f32 0.0, %v558_v51  ;;  %v480_v16 = vmax.f32 %v479_v10, 0.0  ;;  %v557_v28 = vmax.f32 %v556_v21, 0.0 }
  0xf4   :  { %v332_v53 = vmul.f32 1.442695, %v331_v52  ;;  %v406_v55 = vmul.f32 1.442695, %v405_v43 }
  0xf5   :  { %v483_v40 = vmul.f32 1.442695, %v482_v33  ;;  %v560_v25 = vmul.f32 1.442695, %v559_v39  ;;  %v577_v33 = vld [vmem:[#allocation8] sm:$0x1] }
  0xf6   :  { %710 = vpow2.f32 %v332_v53 }
  0xf7   :  { %712 = vpow2.f32 %v406_v55 }
  0xf8   :  { %714 = vpow2.f32 %v483_v40 }
  0xf9   :  { %716 = vpow2.f32 %v560_v25 }
  0xfc   :  { %v711_v30 = vpop.eup %710 }
  0xfd   :  { %v713_v29 = vpop.eup %712  ;;  %v334_v31 = vadd.f32 1.0, %v711_v30  ;;  %v337_v58 = vmul.f32 -0.5, %v711_v30  ;;  %v340_v2 = vand.u32 2147483647, %v711_v30 }
  0xfe   :  { %v715_v45 = vpop.eup %714  ;;  %v408_v59 = vadd.f32 1.0, %v713_v29  ;;  %v411_v61 = vmul.f32 -0.5, %v713_v29  ;;  %v414_v7 = vand.u32 2147483647, %v713_v29 }
  0xff   :  { %v717_v60 = vpop.eup %716  ;;  %718 = vlog2.f32 %v334_v31  ;;  %v485_v62 = vadd.f32 1.0, %v715_v45  ;;  %v488_v35 = vmul.f32 -0.5, %v715_v45  ;;  %v338_v1 = vadd.f32 1.0, %v337_v58 }
 0x100   :  { %720 = vlog2.f32 %v408_v59  ;;  %v562_v57 = vadd.f32 1.0, %v717_v60  ;;  %v565_v46 = vmul.f32 -0.5, %v717_v60  ;;  %v412_v6 = vadd.f32 1.0, %v411_v61 }
 0x101   :  { %722 = vlog2.f32 %v485_v62  ;;  %v489_v8 = vadd.f32 1.0, %v488_v35  ;;  %v491_v11 = vand.u32 2147483647, %v715_v45  ;;  %v339_v4 = vmul.f32 %v711_v30, %v338_v1 }
 0x102   :  { %724 = vlog2.f32 %v562_v57  ;;  %v566_v12 = vadd.f32 1.0, %v565_v46  ;;  %vm341_vm1 = vcmp.lt.f32.partialorder %v340_v2, 0.0004427343  ;;  %v413_v13 = vmul.f32 %v713_v29, %v412_v6 }
 0x103   :  { %v568_v14 = vand.u32 2147483647, %v717_v60  ;;  %vm415_vm10 = vcmp.lt.f32.partialorder %v414_v7, 0.0004427343  ;;  %v490_v37 = vmul.f32 %v715_v45, %v489_v8  ;;  %vm492_vm5 = vcmp.lt.f32.partialorder %v491_v11, 0.0004427343 }
 0x104   :  { %v567_v48 = vmul.f32 %v717_v60, %v566_v12 }
 0x105   :  { %v719_v9 = vpop.eup %718  ;;  %vm569_vm3 = vcmp.lt.f32.partialorder %v568_v14, 0.0004427343 }
 0x106   :  { %v721_v20 = vpop.eup %720  ;;  %v336_v3 = vmul.f32 0.6931472, %v719_v9 }
 0x107   :  { %v723_v23 = vpop.eup %722  ;;  %v410_v5 = vmul.f32 0.6931472, %v721_v20 }
 0x108   :  { %v342_v54 = vsel %vm341_vm1, %v339_v4, %v336_v3  ;;  %v487_v24 = vmul.f32 0.6931472, %v723_v23  ;;  %v725_v15 = vpop.eup %724 }
 0x109   :  { %v416_v36 = vsel %vm415_vm10, %v413_v13, %v410_v5  ;;  %v343_v17 = vadd.f32 %v342_v54, %v329_v22  ;;  %v564_v27 = vmul.f32 0.6931472, %v725_v15 }
 0x10a   :  { %v417_v18 = vadd.f32 %v416_v36, %v403_v56  ;;  %v493_v26 = vsel %vm492_vm5, %v490_v37, %v487_v24 }
 0x10b   :  { %v494_v32 = vadd.f32 %v493_v26, %v480_v16  ;;  %v570_v38 = vsel %vm569_vm3, %v567_v48, %v564_v27  ;;  %v344_v44 = vmul.f32 %v662_v19, %v343_v17 }
 0x10c   :  { %v418_v34 = vmul.f32 %v662_v19, %v417_v18  ;;  %v571_v42 = vadd.f32 %v570_v38, %v557_v28 }
 0x10d   :  { %v495_v41 = vmul.f32 %v662_v19, %v494_v32 }
 0x10e   :  { %v420_v47 = vrot.slane %v418_v34, 1  ;;  %v572_v49 = vmul.f32 %v662_v19, %v571_v42 }
 0x10f   :  { %v497_v51 = vrot.slane %v495_v41, 2 }
 0x110   :  { %v422_v50 = vadd.f32 %v420_v47, %v344_v44  ;;  %v574_v43 = vrot.slane %v572_v49, 3 }
 0x112   :  { %v499_v52 = vadd.f32 %v497_v51, %v422_v50 }
 0x114   :  { %v576_v39 = vadd.f32 %v574_v43, %v499_v52 }
 0x116   :  { %v578_v53 = vadd.f32 %v577_v33, %v576_v39 }
 0x118   :  { %579 = vst [vmem:[#allocation8] sm:$0x1] %v578_v53 }
 0x119   :  { %590 = dma.vmem_to_hbm [thread:$0]  %s586_s2, 16, %s588_s30, [#allocation4]  }
 0x11a   :  { %826 = dma.done.wait [#allocation4], 16  }
 0x11b   :  { %827 = vsyncadd [#allocation4], 4294967280 }
 0x11c   :  { %595 = vsyncpa [#allocation3], 1 }
 0x11d   :  { %596 = vsyncpa [#allocation6], 1 }
 0x11e   :  { %597 = vsyncpa [#allocation4], 1 }

</bundles_post_ra>
